<compile_context>
chip_gen: v6e
topology: v6e:2x2x1
jax: 0.10.0
libtpu: 0.0.40
codegen_flags: <defaults>
</compile_context>

<pallas_src>
import numpy as np
import jax
import jax.numpy as jnp
from jax.experimental import pallas as pl
from jax.experimental.pallas import tpu as pltpu


def _pe_kernel(x_ref, cls_ref, pe_ref, o_ref):
    # x_ref:   (TB, S, E)     batch tile
    # cls_ref: (1, E)         cls token (shared across batch)
    # pe_ref:  (S+1, E)       positional table slice (shared across batch)
    # o_ref:   (TB, S+1, E)
    tb, s, e = x_ref.shape

    # Row 0 of every batch element: cls + pe[0].
    cls_row = cls_ref[...] + pe_ref[pl.ds(0, 1), :]                      # (1, E)
    o_ref[:, pl.ds(0, 1), :] = jnp.broadcast_to(cls_row[None, :, :], (tb, 1, e))

    # Rows 1..S: x + pe[1:].  Broadcast add streams straight to the store.
    o_ref[:, pl.ds(1, s), :] = x_ref[...] + pe_ref[pl.ds(1, s), :][None, :, :]


def positional_encoding(x, cls_token, pe_table):
    """x: (B, S, E); cls_token: (1, 1, E); pe_table: (max_len, E)."""
    B, S, E = x.shape
    pe_slice = pe_table[: S + 1, :].astype(x.dtype)   # (S+1, E) -- static glue slice
    cls2d = cls_token.reshape(1, E).astype(x.dtype)   # (1, E)

    itemsize = jnp.dtype(x.dtype).itemsize

    # Batch-tile sizing: per batch element we hold (double-buffered) the input
    # block (S*E) and the output block ((S+1)*E).  Budget ~24 MiB for these so
    # the call fits comfortably on v7x (64 MiB VMEM / 32 MiB scoped default)
    # as well as v5e/v6e.  pe + cls blocks are tiny and constant-indexed.
    block_budget = 24 << 20
    bytes_per_b = 2 * (S * E + (S + 1) * E) * itemsize
    tb_cap = max(1, int(block_budget // max(bytes_per_b, 1)))
    tb = 1
    for cand in range(min(B, tb_cap), 0, -1):
        if B % cand == 0:
            tb = cand
            break
    grid = (B // tb,)

    # NOTE: for production ViT dims (E=768) the output lane dim is a multiple
    # of 128 (lane-dense stores); at the small test E=32 the stores are masked
    # but the full-dim block shape keeps the BlockSpec legal.
    out_bytes = B * (S + 1) * E * itemsize
    cost = pl.CostEstimate(
        flops=B * (S + 1) * E,
        transcendentals=0,
        bytes_accessed=(x.size + cls2d.size + pe_slice.size) * itemsize + out_bytes,
    )

    return pl.pallas_call(
        _pe_kernel,
        out_shape=jax.ShapeDtypeStruct((B, S + 1, E), x.dtype),
        grid=grid,
        in_specs=[
            pl.BlockSpec((tb, S, E), lambda b: (b, 0, 0)),
            pl.BlockSpec((1, E), lambda b: (0, 0)),        # constant block: held resident
            pl.BlockSpec((S + 1, E), lambda b: (0, 0)),    # constant block: held resident
        ],
        out_specs=pl.BlockSpec((tb, S + 1, E), lambda b: (b, 0, 0)),
        compiler_params=pltpu.CompilerParams(
            dimension_semantics=("parallel",),
            vmem_limit_bytes=48 << 20,
        ),
        cost_estimate=cost,
    )(x, cls2d, pe_slice)


def make_pe_table(embed_dim, max_len=5000, dtype=jnp.float32):
    """Replicates the PyTorch sin/cos buffer construction."""
    position = np.arange(0, max_len, dtype=np.float32)[:, None]         # (L, 1)
    div_term = np.exp(np.arange(0, embed_dim, 2, dtype=np.float32)
                      * (-np.log(10000.0) / embed_dim))                 # (E/2,)
    pe = np.zeros((max_len, embed_dim), dtype=np.float32)
    pe[:, 0::2] = np.sin(position * div_term)
    pe[:, 1::2] = np.cos(position * div_term)
    return jnp.asarray(pe, dtype=dtype)


if __name__ == "__main__":
    B, S, E = 2, 8, 32
    max_len = 64  # small deterministic table (only first S+1 rows are used)

    key = jax.random.PRNGKey(0)
    k_x, k_cls = jax.random.split(key)
    x = jax.random.normal(k_x, (B, S, E), dtype=jnp.float32)
    cls_token = jax.random.normal(k_cls, (1, 1, E), dtype=jnp.float32)  # nn.Parameter(randn(1,1,E))
    pe_table = make_pe_table(E, max_len=max_len)

    out = positional_encoding(x, cls_token, pe_table)
    out = jax.block_until_ready(out)

    # Pure-JAX reference for verification.
    tokens_batch = jnp.broadcast_to(cls_token, (B, 1, E))
    ref = jnp.concatenate([tokens_batch, x], axis=1) + pe_table[None, : S + 1, :]

    assert out.shape == (B, S + 1, E), out.shape
    np.testing.assert_allclose(np.asarray(out), np.asarray(ref), rtol=1e-6, atol=1e-6)
    print("KERNEL_OK")
</pallas_src>

<mosaic_0001>
module attributes {stable_mosaic.version = 11 : i64} {
  func.func @_pe_kernel(%arg0: i32, %arg1: memref<2x8x32xf32, #tpu.memory_space<vmem>>, %arg2: memref<1x32xf32, #tpu.memory_space<vmem>>, %arg3: memref<9x32xf32, #tpu.memory_space<vmem>>, %arg4: memref<2x9x32xf32, #tpu.memory_space<vmem>>) attributes {dimension_semantics = [#tpu.dimension_semantics<parallel>], iteration_bounds = array<i64: 1>, scalar_prefetch = 0 : i64, scratch_operands = 0 : i64, tpu.core_type = #tpu.core_type<tc>, window_params = [{transform_indices = @transform_0, window_bounds = array<i64: 2, 8, 32>}, {pipeline_mode = #tpu.pipeline_mode<synchronous>, transform_indices = @transform_1, window_bounds = array<i64: 1, 32>}, {pipeline_mode = #tpu.pipeline_mode<synchronous>, transform_indices = @transform_2, window_bounds = array<i64: 9, 32>}, {transform_indices = @transform_3, window_bounds = array<i64: 2, 9, 32>}]} {
    %c0 = arith.constant 0 : index
    %c0_0 = arith.constant 0 : index
    %0 = vector.load %arg2[%c0, %c0_0] : memref<1x32xf32, #tpu.memory_space<vmem>>, vector<1x32xf32>
    %c0_1 = arith.constant 0 : index
    %c0_2 = arith.constant 0 : index
    %1 = vector.load %arg3[%c0_1, %c0_2] : memref<9x32xf32, #tpu.memory_space<vmem>>, vector<1x32xf32>
    %2 = arith.addf %0, %1 : vector<1x32xf32>
    %3 = vector.shape_cast %2 : vector<1x32xf32> to vector<1x1x32xf32>
    %4 = vector.shape_cast %3 : vector<1x1x32xf32> to vector<1x1x32xf32>
    %5 = vector.broadcast %4 : vector<1x1x32xf32> to vector<2x1x32xf32>
    %c0_3 = arith.constant 0 : index
    %c0_4 = arith.constant 0 : index
    %c0_5 = arith.constant 0 : index
    %6 = vector.load %arg4[%c0_3, %c0_4, %c0_5] : memref<2x9x32xf32, #tpu.memory_space<vmem>>, vector<2x1x32xf32>
    tpu.vector_store %arg4[%c0_3, %c0_4, %c0_5], %5 {strides = array<i32>} : memref<2x9x32xf32, #tpu.memory_space<vmem>>, vector<2x1x32xf32>,
    %c0_6 = arith.constant 0 : index
    %c0_7 = arith.constant 0 : index
    %c0_8 = arith.constant 0 : index
    %7 = vector.load %arg1[%c0_6, %c0_7, %c0_8] : memref<2x8x32xf32, #tpu.memory_space<vmem>>, vector<2x8x32xf32>
    %c1 = arith.constant 1 : index
    %c0_9 = arith.constant 0 : index
    %8 = vector.load %arg3[%c1, %c0_9] : memref<9x32xf32, #tpu.memory_space<vmem>>, vector<8x32xf32>
    %9 = vector.shape_cast %8 : vector<8x32xf32> to vector<1x8x32xf32>
    %10 = vector.broadcast %9 : vector<1x8x32xf32> to vector<2x8x32xf32>
    %11 = arith.addf %7, %10 : vector<2x8x32xf32>
    %c0_10 = arith.constant 0 : index
    %c1_11 = arith.constant 1 : index
    %c0_12 = arith.constant 0 : index
    %12 = vector.load %arg4[%c0_10, %c1_11, %c0_12] : memref<2x9x32xf32, #tpu.memory_space<vmem>>, vector<2x8x32xf32>
    tpu.vector_store %arg4[%c0_10, %c1_11, %c0_12], %11 {strides = array<i32>} : memref<2x9x32xf32, #tpu.memory_space<vmem>>, vector<2x8x32xf32>,
    return
  }
  func.func @transform_0(%arg0: i32) -> (i32, i32, i32) {
    %c0_i32 = arith.constant 0 : i32
    %c0_i32_0 = arith.constant 0 : i32
    %c0_i32_1 = arith.constant 0 : i32
    return %arg0, %c0_i32, %c0_i32_0 : i32, i32, i32
  }
  func.func @transform_1(%arg0: i32) -> (i32, i32) {
    %c0_i32 = arith.constant 0 : i32
    %c0_i32_0 = arith.constant 0 : i32
    %c0_i32_1 = arith.constant 0 : i32
    return %c0_i32, %c0_i32_0 : i32, i32
  }
  func.func @transform_2(%arg0: i32) -> (i32, i32) {
    %c0_i32 = arith.constant 0 : i32
    %c0_i32_0 = arith.constant 0 : i32
    %c0_i32_1 = arith.constant 0 : i32
    return %c0_i32, %c0_i32_0 : i32, i32
  }
  func.func @transform_3(%arg0: i32) -> (i32, i32, i32) {
    %c0_i32 = arith.constant 0 : i32
    %c0_i32_0 = arith.constant 0 : i32
    %c0_i32_1 = arith.constant 0 : i32
    return %arg0, %c0_i32, %c0_i32_0 : i32, i32, i32
  }
}

</mosaic_0001>

<bundles_post_ra>
// kernel: tpu_custom_call.1
= control target key start
LH: loop header
LB: loop body
LE: loop exit
PB: predicated region body
PF: predicated region fallthrough
CT: control target
= control target key end

     0   :  { %8 = vsyncpa [#allocation3], 0  ;;  %s155_s0 = inlined_call_operand.hbm [shape: f32[2,8,32], index: 0, kind: input, shape index: {}]   ;;  %s156_s1 = inlined_call_operand.vmem [shape: f32[1,32], index: 1, kind: input, shape index: {}]   ;;  %s157_s2 = inlined_call_operand.hbm [shape: f32[9,32], index: 2, kind: input, shape index: {}]   ;;  %s158_s3 = inlined_call_operand.vmem [shape: f32[2,9,32], index: 3, kind: output, shape index: {}]  }
   0x1   :  { %9 = vsyncpa [#allocation5], 0  ;;  %s110_s12 = smov [#allocation2]  }
   0x2   :  { %s15_s13 = sshll.u32 %s110_s12, 4  ;;  %s16_s13 = int_to_ptr.vmem [resolvable:$true] %s15_s13 }
   0x3   :  { %s74_s14 = scalar_lea.vmem %s16_s13, 256  ;;  %p79_p1 = scmp.lt.s32.totalorder %s16_s13, %s16_s13 }
   0x4   :  { %p75_p0 = scmp.ne.s32.totalorder %s16_s13, %s74_s14  ;;  %p80_p2 = scmp.lt.s32.totalorder %s74_s14, %s74_s14 }
   0x6   :  { %p81_p3 = por %p80_p2, %p79_p1 }
   0x8   :  { %p82_p4 = pnand %p81_p3, %p75_p0 }
   0xa   :  { %85 = shalt.err (!%p82_p4)
}
   0xb   :  { %s111_s15 = smov 128   ;;  %s112_s16 = smov 8  }
   0xc   :  { %21 = dma.hbm_to_vmem [thread:$0]  %s155_s0, 256, %s16_s13, [#allocation3], %s111_s15, %s111_s15, %s112_s16  }
   0xd   :  { %s113_s19 = smov [#allocation4]  }
   0xe   :  { %s29_s20 = sshll.u32 %s113_s19, 4  ;;  %s30_s20 = int_to_ptr.vmem [resolvable:$true] %s29_s20 }
   0xf   :  { %s94_s21 = scalar_lea.vmem %s30_s20, 256  ;;  %p99_p6 = scmp.lt.s32.totalorder %s30_s20, %s30_s20 }
  0x10   :  { %p95_p5 = scmp.ne.s32.totalorder %s30_s20, %s94_s21  ;;  %p100_p7 = scmp.lt.s32.totalorder %s94_s21, %s94_s21 }
  0x12   :  { %p101_p8 = por %p100_p7, %p99_p6 }
  0x14   :  { %p102_p9 = pnand %p101_p8, %p95_p5 }
  0x16   :  { %105 = shalt.err (!%p102_p9)
}
  0x17   :  { %35 = dma.hbm_to_vmem [thread:$0]  %s157_s2, 256, %s30_s20, [#allocation5], %s111_s15, %s111_s15, %s112_s16  }
  0x18   :  { %106 = dma.done.wait [#allocation3], 256  }
  0x19   :  { %107 = vsyncadd [#allocation3], 4294967040 }
  0x1a   :  { %108 = dma.done.wait [#allocation5], 256  }
  0x1b   :  { %109 = vsyncadd [#allocation5], 4294967040  ;;  %v42_v0 = vld [vmem:[%s156_s1] sm:$0x1]  ;;  %v43_v1 = vld [vmem:[#allocation4] sm:$0x1] }
  0x1c   :  { %vm45_vm0 = vcmask 253952   ;;  %v48_v2 = vld [vmem:[#allocation2] sm:$0xff]  ;;  %v44_v3 = vadd.f32 %v43_v1, %v42_v0  ;;  %v50_v4 = vld [vmem:[#allocation4 + $0x1] sm:$0xff]  ;;  %vm53_vm1 = vcmask 261120   ;;  %v49_v5 = vld [vmem:[#allocation2 + $0x8] sm:$0xff] }
  0x1d   :  { %v51_v6 = vadd.f32 %v50_v4, %v48_v2  ;;  %v52_v7 = vadd.f32 %v50_v4, %v49_v5 }
  0x1e   :  { %46 = vst.msk [vmem:[%s158_s3] sm:$0x1] %vm45_vm0, %v44_v3  ;;  %47 = vst.msk [vmem:[%s158_s3 + $0x10] sm:$0x1] %vm45_vm0, %v44_v3 }
  0x1f   :  { %54 = vst.msk [vmem:[%s158_s3 + $0x1] sm:$0xff] %vm53_vm1, %v51_v6  ;;  %55 = vst.msk [vmem:[%s158_s3 + $0x11] sm:$0xff] %vm53_vm1, %v52_v7 }
  0x20   :  { %60 = vsyncpa [#allocation3], 1 }
  0x21   :  { %61 = vsyncpa [#allocation5], 1 }

</bundles_post_ra>
